<compile_context>
chip_gen: v6e
topology: v6e:2x2x1
jax: 0.10.0
libtpu: 0.0.40
codegen_flags: <defaults>
</compile_context>

<pallas_src>
import functools

import numpy as np
import jax
import jax.numpy as jnp
from jax.experimental import pallas as pl
from jax.experimental.pallas import tpu as pltpu


# ----------------------------------------------------------------------------
# Small helpers
# ----------------------------------------------------------------------------

def _round_up(x, m):
    return ((x + m - 1) // m) * m


def _vmem_capacity_bytes():
    """Per-core VMEM capacity; conservative fallback if the query is unavailable."""
    try:
        cap = int(getattr(pltpu.get_tpu_info(), "vmem_capacity_bytes"))
        if cap > 0:
            return cap
    except Exception:
        pass
    return 64 << 20          # v7x per-TensorCore VMEM (smallest of v5e/v6e/v7x)


def _pick_row_tile(n_rows, bytes_per_row, *, target_bytes, multiple=8, min_steps=2):
    """Largest row-tile (multiple-aligned) whose per-step footprint is <= target_bytes,
    capped so the grid keeps >= min_steps steps (lets Mosaic split the 'parallel' grid
    across v7x's two TensorCores).  `bytes_per_row` must already include (8,128) padding,
    the output stream and any accumulator."""
    if n_rows <= multiple:
        return n_rows                                    # full dim -> always layout-legal
    t = (int(target_bytes) // max(1, int(bytes_per_row))) // multiple * multiple
    t = max(multiple, t)
    cap = _round_up(pl.cdiv(n_rows, min_steps), multiple)
    return min(t, cap)


def _vmem_limit_bytes(step_bytes, resident_bytes, capacity):
    """Explicit scoped-VMEM limit: double-buffered streamed blocks + resident data + slack."""
    need = 2 * step_bytes + resident_bytes + (2 << 20)
    return int(min(int(0.9 * capacity), max(need, 32 << 20)))


# ----------------------------------------------------------------------------
# Kernels
# ----------------------------------------------------------------------------

def _add_kernel(x_ref, enc_ref, o_ref):
    # Either 3D: x (TS, B, D) + enc (TS, 1, D)  (broadcast over batch sublanes)
    # or     2D: x (TR, C)    + enc (TR, C)     (lane-dense flat view)
    o_ref[...] = x_ref[...] + enc_ref[...]


def _concat_linear_kernel(x_ref, w_ref, enc_ref, o_ref, *, precision):
    # x_ref:   (TM, K)       rows of x (K = d_model, no reduction grid axis)
    # w_ref:   (K, D_out)    resident weight (constant index_map -> DMA'd once)
    # enc_ref: (TM, D_out)   per-row encoding projection + bias (precomputed, fp32)
    # o_ref:   (TM, D_out)
    acc = jnp.dot(x_ref[...], w_ref[...],
                  preferred_element_type=jnp.float32, precision=precision)
    o_ref[...] = (acc + enc_ref[...]).astype(o_ref.dtype)


# ----------------------------------------------------------------------------
# pallas_call wrappers
# ----------------------------------------------------------------------------

def _add_enc_bcast(x, enc_s3, capacity):
    """x: [S, B, D] (B >= 8), enc_s3: [S, 1, D] same dtype.  out = x + enc (broadcast B)."""
    S, B, D = x.shape
    isz = jnp.dtype(x.dtype).itemsize
    Dp = _round_up(D, 128)
    # padded bytes per sequence row: x in + out (B->8 sublane pad) + enc (1->8 pad)
    per_row = (2 * _round_up(B, 8) + 8) * Dp * isz
    TS = _pick_row_tile(S, per_row, target_bytes=capacity // 8, multiple=1)
    limit = _vmem_limit_bytes(per_row * TS, 0, capacity)
    return pl.pallas_call(
        _add_kernel,
        out_shape=jax.ShapeDtypeStruct(x.shape, x.dtype),
        grid=(pl.cdiv(S, TS),),
        in_specs=[pl.BlockSpec((TS, B, D), lambda i: (i, 0, 0)),
                  pl.BlockSpec((TS, 1, D), lambda i: (i, 0, 0))],
        out_specs=pl.BlockSpec((TS, B, D), lambda i: (i, 0, 0)),
        # In-place add: drops one HBM buffer.  XLA copies x first if the caller still
        # needs it, so caller-visible semantics are unchanged.
        input_output_aliases={0: 0},
        compiler_params=pltpu.CompilerParams(
            dimension_semantics=("parallel",), vmem_limit_bytes=limit),
    )(x, enc_s3)


def _add_enc_flat(x2d, enc2d, capacity):
    """x2d, enc2d: same-shape 2D slabs (ideally lane-dense, last dim 128)."""
    R, C = x2d.shape
    isz = jnp.dtype(x2d.dtype).itemsize
    per_row = 3 * _round_up(C, 128) * isz            # x in + enc in + out
    TR = _pick_row_tile(R, per_row, target_bytes=capacity // 8, multiple=8)
    limit = _vmem_limit_bytes(per_row * TR, 0, capacity)
    return pl.pallas_call(
        _add_kernel,
        out_shape=jax.ShapeDtypeStruct(x2d.shape, x2d.dtype),
        grid=(pl.cdiv(R, TR),),
        in_specs=[pl.BlockSpec((TR, C), lambda i: (i, 0)),
                  pl.BlockSpec((TR, C), lambda i: (i, 0))],
        out_specs=pl.BlockSpec((TR, C), lambda i: (i, 0)),
        input_output_aliases={0: 0},
        compiler_params=pltpu.CompilerParams(
            dimension_semantics=("parallel",), vmem_limit_bytes=limit),
    )(x2d, enc2d)


def _concat_linear(x2d, w_x, enc2d, precision, capacity):
    """x2d: [N, K], w_x: [K, D_out] (resident), enc2d: [N, D_out] fp32 (pos/agent proj + bias)."""
    N, K = x2d.shape
    Dout = w_x.shape[1]
    isz = jnp.dtype(x2d.dtype).itemsize
    Kp, Dp = _round_up(K, 128), _round_up(Dout, 128)
    # padded bytes per output row: x row + enc row (f32) + out row + f32 accumulator
    per_row = Kp * isz + Dp * 4 + Dp * isz + Dp * 4
    w_bytes = _round_up(K, 8) * Dp * jnp.dtype(w_x.dtype).itemsize
    TM = _pick_row_tile(N, per_row, target_bytes=capacity // 8, multiple=8)
    limit = _vmem_limit_bytes(per_row * TM, 2 * w_bytes, capacity)
    kernel = functools.partial(_concat_linear_kernel, precision=precision)
    return pl.pallas_call(
        kernel,
        out_shape=jax.ShapeDtypeStruct((N, Dout), x2d.dtype),
        grid=(pl.cdiv(N, TM),),
        in_specs=[pl.BlockSpec((TM, K), lambda i: (i, 0)),
                  pl.BlockSpec((K, Dout), lambda i: (0, 0)),     # weight resident in VMEM
                  pl.BlockSpec((TM, Dout), lambda i: (i, 0))],
        out_specs=pl.BlockSpec((TM, Dout), lambda i: (i, 0)),
        compiler_params=pltpu.CompilerParams(
            dimension_semantics=("parallel",), vmem_limit_bytes=limit),
    )(x2d, w_x, enc2d)


# ----------------------------------------------------------------------------
# Module (parameters + glue)
# ----------------------------------------------------------------------------

def _build_sinusoid_table(max_len, d_model):
    position = np.arange(max_len, dtype=np.float32)[:, None]
    div_term = np.exp(np.arange(0, d_model, 2, dtype=np.float32)
                      * (-np.log(10000.0) / d_model))
    tbl = np.zeros((max_len, d_model), dtype=np.float32)
    tbl[:, 0::2] = np.sin(position * div_term)
    tbl[:, 1::2] = np.cos(position * div_term)
    return jnp.asarray(tbl)


class PositionalAgentEncodingPallas:
    """JAX/Pallas port of PositionalAgentEncoding (forward / eval mode)."""

    def __init__(self, d_model, dropout=0.1, max_t_len=200, max_a_len=200,
                 concat=False, use_agent_enc=False, agent_enc_learn=False, rng=None,
                 matmul_precision=jax.lax.Precision.DEFAULT):
        if rng is None:
            rng = jax.random.PRNGKey(0)
        self.d_model = d_model
        self.concat = concat
        self.use_agent_enc = use_agent_enc
        self.dropout_p = dropout  # TODO(synk): stochastic dropout for training (pltpu.prng_*)
        # DEFAULT avoids fp32 HIGHEST multi-pass MXU emulation (biggest deal on v5e).
        self.matmul_precision = matmul_precision
        self._enc_cache = {}

        self.pe = _build_sinusoid_table(max_t_len, d_model)            # [max_t_len, d]
        if use_agent_enc:
            if agent_enc_learn:
                rng, k = jax.random.split(rng)
                self.ae = 0.1 * jax.random.normal(k, (max_a_len, d_model), jnp.float32)
            else:
                self.ae = _build_sinusoid_table(max_a_len, d_model)    # [max_a_len, d]
        else:
            self.ae = None

        if concat:
            in_f = (3 if use_agent_enc else 2) * d_model
            rng, k1, k2 = jax.random.split(rng, 3)
            bound = 1.0 / np.sqrt(in_f)
            # Stored as [in_features, d_model] == torch fc.weight.T (concat order [x, pos, agent]).
            self.W = jax.random.uniform(k1, (in_f, d_model), jnp.float32, -bound, bound)
            self.b = jax.random.uniform(k2, (d_model,), jnp.float32, -bound, bound)
            # Split once (cached) instead of re-slicing per call.  Kept in fp32 (no silent
            # down-cast); callers wanting bf16 GEMMs should cast x AND W explicitly.
            self.Wx = self.W[:d_model]
            self.Wp = self.W[d_model:2 * d_model]
            self.Wa = self.W[2 * d_model:3 * d_model] if use_agent_enc else None
        else:
            self.W = self.b = self.Wx = self.Wp = self.Wa = None

    # -- glue: tiny per-sequence-row encoding tables (cached when shuffle is None) ----

    def _agent_rows(self, num_a, a_offset, shuffle):
        if shuffle is not None:
            return self.ae[shuffle]
        return self.ae[a_offset:a_offset + num_a]

    def _add_row_enc(self, num_t, num_a, t_offset, a_offset, shuffle, dtype):
        key = None
        if shuffle is None:
            key = ("add", num_t, num_a, t_offset, a_offset, jnp.dtype(dtype).name)
            if key in self._enc_cache:
                return self._enc_cache[key]
        enc_s = jnp.repeat(self.pe[t_offset:t_offset + num_t], num_a, axis=0)   # [S, d]
        if self.use_agent_enc:
            enc_s = enc_s + jnp.tile(self._agent_rows(num_a, a_offset, shuffle), (num_t, 1))
        enc_s = enc_s.astype(dtype)
        if key is not None:
            self._enc_cache[key] = enc_s
        return enc_s

    def _concat_row_enc(self, num_t, num_a, B, t_offset, a_offset, shuffle):
        key = None
        if shuffle is None:
            key = ("cat", num_t, num_a, B, t_offset, a_offset, self.matmul_precision)
            if key in self._enc_cache:
                return self._enc_cache[key]
        prec = self.matmul_precision
        enc_t = jnp.dot(self.pe[t_offset:t_offset + num_t], self.Wp, precision=prec)  # [T, d]
        enc_s = jnp.repeat(enc_t, num_a, axis=0)                                      # [S, d]
        if self.use_agent_enc:
            enc_a = jnp.dot(self._agent_rows(num_a, a_offset, shuffle), self.Wa, precision=prec)
            enc_s = enc_s + jnp.tile(enc_a, (num_t, 1))
        enc_s = (enc_s + self.b[None, :]).astype(jnp.float32)                         # [S, d]
        S = num_t * num_a
        enc2d = jnp.broadcast_to(enc_s[:, None, :], (S, B, self.d_model)
                                 ).reshape(S * B, self.d_model)                       # [S*B, d]
        if key is not None:
            self._enc_cache[key] = enc2d
        return enc2d

    # -- forward ----------------------------------------------------------------------

    def __call__(self, x, num_a, agent_enc_shuffle=None, t_offset=0, a_offset=0):
        S, B, D = x.shape
        assert D == self.d_model and S % num_a == 0
        num_t = S // num_a
        cap = _vmem_capacity_bytes()

        if self.concat:
            # Fold the concat into the GEMM; the (t, a)-only projections + bias become a
            # tiny row table streamed alongside x.  (d_model >= 128 keeps stores lane-dense.)
            enc2d = self._concat_row_enc(num_t, num_a, B, t_offset, a_offset, agent_enc_shuffle)
            y2d = _concat_linear(x.reshape(S * B, D), self.Wx, enc2d,
                                 self.matmul_precision, cap)
            return y2d.reshape(S, B, D)

        enc_s = self._add_row_enc(num_t, num_a, t_offset, a_offset, agent_enc_shuffle, x.dtype)
        if B >= 8:
            # Batch fills the sublanes: keep the encoding at S granularity (never expanded).
            return _add_enc_bcast(x, enc_s[:, None, :], cap)

        # Small batch: a (TS, B, D) block would pad every (B, D) plane to (8, 128).
        # Flatten instead; pre-expand the (tiny) encoding once and, when possible, view
        # both slabs as lane-dense [*, 128] (free contiguous reshape, unmasked stores).
        enc_full = jnp.broadcast_to(enc_s[:, None, :], (S, B, D)).reshape(S * B, D)
        total = S * B * D
        if total % 128 == 0:
            rows = total // 128
            y2d = _add_enc_flat(x.reshape(rows, 128), enc_full.reshape(rows, 128), cap)
        else:
            y2d = _add_enc_flat(x.reshape(S * B, D), enc_full, cap)
        return y2d.reshape(S, B, D)
        # Eval-mode dropout == identity.


# ----------------------------------------------------------------------------
# Pure-JAX reference (mirrors the PyTorch forward) + demo
# ----------------------------------------------------------------------------

def _reference_forward(mod, x, num_a, agent_enc_shuffle=None, t_offset=0, a_offset=0):
    S, B, D = x.shape
    T = S // num_a
    pos = jnp.repeat(mod.pe[t_offset:t_offset + T], num_a, axis=0)[:, None, :]
    if mod.use_agent_enc:
        ae_rows = (mod.ae[agent_enc_shuffle] if agent_enc_shuffle is not None
                   else mod.ae[a_offset:a_offset + num_a])
        agent = jnp.tile(ae_rows, (T, 1))[:, None, :]
    if mod.concat:
        feat = [x, jnp.broadcast_to(pos, (S, B, D))]
        if mod.use_agent_enc:
            feat.append(jnp.broadcast_to(agent, (S, B, D)))
        xc = jnp.concatenate(feat, axis=-1)
        return jnp.dot(xc, mod.W, precision=jax.lax.Precision.HIGHEST) + mod.b
    y = x + pos
    if mod.use_agent_enc:
        y = y + agent
    return y


if __name__ == "__main__":
    key = jax.random.PRNGKey(0)
    d_model, num_a, num_t, batch = 32, 4, 8, 2
    S = num_t * num_a
    k_x, k_x8, k_mod = jax.random.split(key, 3)
    x = jax.random.normal(k_x, (S, batch, d_model), jnp.float32)

    # ---- concat=True path (fused GEMM + broadcast-add kernel), with agent encoding ----
    # Tight check with HIGHEST precision (validates indexing / weight-fold exactly).
    mod_cat = PositionalAgentEncodingPallas(
        d_model, concat=True, use_agent_enc=True, max_t_len=64, max_a_len=64, rng=k_mod,
        matmul_precision=jax.lax.Precision.HIGHEST)
    ref_cat = _reference_forward(mod_cat, x, num_a)
    out_cat = jax.block_until_ready(mod_cat(x, num_a))
    assert np.allclose(np.asarray(out_cat), np.asarray(ref_cat), atol=1e-3, rtol=1e-3), \
        "concat path mismatch (HIGHEST)"

    # Production default (Precision.DEFAULT, no fp32 pass-expansion): loose check only,
    # since DEFAULT may truncate MXU operands to bf16.
    mod_cat.matmul_precision = jax.lax.Precision.DEFAULT
    out_cat_fast = jax.block_until_ready(mod_cat(x, num_a))
    assert np.allclose(np.asarray(out_cat_fast), np.asarray(ref_cat), atol=5e-2, rtol=5e-2), \
        "concat path mismatch (DEFAULT)"

    # ---- concat=False path, small batch (lane-dense flattened add kernel), t_offset=1 ----
    mod_add = PositionalAgentEncodingPallas(
        d_model, concat=False, use_agent_enc=True, max_t_len=64, max_a_len=64, rng=k_mod)
    ref_add = _reference_forward(mod_add, x, num_a, t_offset=1)
    out_add = jax.block_until_ready(mod_add(x, num_a, t_offset=1))
    assert np.allclose(np.asarray(out_add), np.asarray(ref_add), atol=1e-5, rtol=1e-5), \
        "add path (flat) mismatch"

    # ---- concat=False path, batch >= 8 (3D broadcast add kernel, enc never expanded) ----
    x8 = jax.random.normal(k_x8, (S, 8, d_model), jnp.float32)
    ref_add8 = _reference_forward(mod_add, x8, num_a)
    out_add8 = jax.block_until_ready(mod_add(x8, num_a))
    assert np.allclose(np.asarray(out_add8), np.asarray(ref_add8), atol=1e-5, rtol=1e-5), \
        "add path (broadcast) mismatch"

    print("KERNEL_OK")
</pallas_src>

<mosaic_0001>
module attributes {stable_mosaic.version = 11 : i64} {
  func.func @_concat_linear_kernel(%arg0: i32, %arg1: memref<32x32xf32, #tpu.memory_space<vmem>>, %arg2: memref<32x32xf32, #tpu.memory_space<vmem>>, %arg3: memref<32x32xf32, #tpu.memory_space<vmem>>, %arg4: memref<32x32xf32, #tpu.memory_space<vmem>>) attributes {dimension_semantics = [#tpu.dimension_semantics<parallel>], iteration_bounds = array<i64: 2>, scalar_prefetch = 0 : i64, scratch_operands = 0 : i64, tpu.core_type = #tpu.core_type<tc>, window_params = [{transform_indices = @transform_0, window_bounds = array<i64: 32, 32>}, {pipeline_mode = #tpu.pipeline_mode<synchronous>, transform_indices = @transform_1, window_bounds = array<i64: 32, 32>}, {transform_indices = @transform_2, window_bounds = array<i64: 32, 32>}, {transform_indices = @transform_3, window_bounds = array<i64: 32, 32>}]} {
    %c0 = arith.constant 0 : index
    %c0_0 = arith.constant 0 : index
    %0 = vector.load %arg1[%c0, %c0_0] : memref<32x32xf32, #tpu.memory_space<vmem>>, vector<32x32xf32>
    %c0_1 = arith.constant 0 : index
    %c0_2 = arith.constant 0 : index
    %1 = vector.load %arg2[%c0_1, %c0_2] : memref<32x32xf32, #tpu.memory_space<vmem>>, vector<32x32xf32>
    %cst = arith.constant dense<0.000000e+00> : vector<32x32xf32>
    %2 = tpu.matmul %0, %1, %cst {dimension_numbers = #tpu.dot_dimension_numbers<[1], [0], [0], [1], [0, 0, 1, 1], [], []>, precision = #tpu.contract_precision<fp32>} : vector<32x32xf32>, vector<32x32xf32>, vector<32x32xf32> -> vector<32x32xf32>
    %c0_3 = arith.constant 0 : index
    %c0_4 = arith.constant 0 : index
    %3 = vector.load %arg3[%c0_3, %c0_4] : memref<32x32xf32, #tpu.memory_space<vmem>>, vector<32x32xf32>
    %4 = arith.addf %2, %3 : vector<32x32xf32>
    %c0_5 = arith.constant 0 : index
    %c0_6 = arith.constant 0 : index
    %5 = vector.load %arg4[%c0_5, %c0_6] : memref<32x32xf32, #tpu.memory_space<vmem>>, vector<32x32xf32>
    tpu.vector_store %arg4[%c0_5, %c0_6], %4 {strides = array<i32>} : memref<32x32xf32, #tpu.memory_space<vmem>>, vector<32x32xf32>,
    return
  }
  func.func @transform_0(%arg0: i32) -> (i32, i32) {
    %c0_i32 = arith.constant 0 : i32
    %c0_i32_0 = arith.constant 0 : i32
    return %arg0, %c0_i32 : i32, i32
  }
  func.func @transform_1(%arg0: i32) -> (i32, i32) {
    %c0_i32 = arith.constant 0 : i32
    %c0_i32_0 = arith.constant 0 : i32
    %c0_i32_1 = arith.constant 0 : i32
    return %c0_i32, %c0_i32_0 : i32, i32
  }
  func.func @transform_2(%arg0: i32) -> (i32, i32) {
    %c0_i32 = arith.constant 0 : i32
    %c0_i32_0 = arith.constant 0 : i32
    return %arg0, %c0_i32 : i32, i32
  }
  func.func @transform_3(%arg0: i32) -> (i32, i32) {
    %c0_i32 = arith.constant 0 : i32
    %c0_i32_0 = arith.constant 0 : i32
    return %arg0, %c0_i32 : i32, i32
  }
}

</mosaic_0001>

<bundles_post_ra>
// kernel: tpu_custom_call.1
= control target key start
LH: loop header
LB: loop body
LE: loop exit
PB: predicated region body
PF: predicated region fallthrough
CT: control target
= control target key end

     0   :  { %s1088_s12 = smov 0   ;;  %s1237_s0 = inlined_call_operand.vmem [shape: f32[64,32], index: 0, kind: input, shape index: {}]   ;;  %s1238_s1 = inlined_call_operand.vmem [shape: f32[32,32], index: 1, kind: input, shape index: {}]   ;;  %s1239_s2 = inlined_call_operand.vmem [shape: f32[64,32], index: 2, kind: input, shape index: {}]   ;;  %s1240_s3 = inlined_call_operand.vmem [shape: f32[64,32], index: 3, kind: output, shape index: {}]  }
   0x1 LB: > { %s907_s13 = sadd.s32 4294967295, %s1066_s12   ;;  %p911_p0 = scmp.ge.s32.totalorder %s1066_s12, 1  ;;  %s1066_s12 = sphi %s1088_s12, %s13_s12  }
   0x2   : > { %p149_p1 = scmp.lt.s32.totalorder %s1066_s12, 3 }
   0x4   : > { %p150_p2 = pnand %p911_p0, %p149_p1 }
   0x5   : > { %s912_s20 = sshll.u32 (!%p150_p2), %s907_s13, 2 }
   0x6   : > { %153 = sbr.rel (%p150_p2) target bundleno = 256 (0x100), region = 32  ;;  %p179_p3 = scmp.lt.s32.totalorder (!%p150_p2), %s912_s20, 7 }
   0xb   : > { %v203_v0 = vld [vmem:[%s1238_s1 + $0x18] sm:$0xff]  ;;  %v202_v1 = vld [vmem:[%s1238_s1 + $0x10] sm:$0xff]  ;;  %v201_v2 = vld [vmem:[%s1238_s1 + $0x8] sm:$0xff]  ;;  %s1242_s20 = smov (!%p179_p3, %s912_s20), 7  ;;  %vm208_vm0 = vcmask 261120  }
   0xc   : > { %v1105_v3 = vand.u32 4294901760, %v203_v0  ;;  %v1107_v4 = vand.u32 4294901760, %v202_v1  ;;  %v1109_v5 = vand.u32 4294901760, %v201_v2  ;;  %v200_v6 = vld [vmem:[%s1238_s1] sm:$0xff]  ;;  %s1140_s23 = sshll.u32 %s1242_s20, 3 }
   0xd   : > { %v1114_v7 = vand.u32 4294901760, %v200_v6  ;;  %s182_s26 = scalar_lea.vmem %s1237_s0, %s1140_s23  ;;  %s188_s29 = scalar_lea.vmem %s1239_s2, %s1140_s23 }
   0xe   : > { %968 = vmatprep.subr.mxu0 %v1105_v3  ;;  %v1118_v8 = vsub.f32 %v203_v0, %v1105_v3  ;;  %v1121_v9 = vsub.f32 %v202_v1, %v1107_v4  ;;  %v1124_v10 = vsub.f32 %v201_v2, %v1109_v5  ;;  %v196_v19 = vld [vmem:[%s182_s26] sm:$0xff]  ;;  %v197_v20 = vld [vmem:[%s182_s26 + $0x8] sm:$0xff]  ;;  %v198_v21 = vld [vmem:[%s182_s26 + $0x10] sm:$0xff]  ;;  %s194_s5 = scalar_lea.vmem %s1240_s3, %s1140_s23 }
   0xf   : > { %969 = vmatpush3.msra.mxu0 %v1105_v3  ;;  %v1128_v11 = vsub.f32 %v200_v6, %v1114_v7  ;;  %v210_v22 = vsel %vm208_vm0, %v196_v19, 0  ;;  %v213_v23 = vsel %vm208_vm0, %v197_v20, 0  ;;  %v216_v24 = vsel %vm208_vm0, %v198_v21, 0  ;;  %v199_v25 = vld [vmem:[%s182_s26 + $0x18] sm:$0xff]  ;;  %v205_v60 = vld [vmem:[%s188_s29 + $0x8] sm:$0xff]  ;;  %v204_v61 = vld [vmem:[%s188_s29] sm:$0xff] }
  0x10   : > { %v1131_v12 = vand.u32 4294901760, %v1118_v8  ;;  %970 = vmatprep.subr.mxu0 %v1107_v4  ;;  %v1135_v13 = vand.u32 4294901760, %v1121_v9  ;;  %v1138_v14 = vand.u32 4294901760, %v1124_v10  ;;  %v1164_v29 = vand.u32 4294901760, %v210_v22 }
  0x11   : > { %971 = vmatpush3.msra.mxu0 %v1107_v4  ;;  %v1144_v15 = vand.u32 4294901760, %v1128_v11  ;;  %v1167_v30 = vand.u32 4294901760, %v213_v23  ;;  %v1169_v31 = vand.u32 4294901760, %v216_v24  ;;  %v219_v32 = vsel %vm208_vm0, %v199_v25, 0 }
  0x12   : > { %v358_v16 = vsub.f32 %v1118_v8, %v1131_v12  ;;  %v365_v17 = vsub.f32 %v1121_v9, %v1135_v13  ;;  %972 = vmatprep.subr.mxu0 %v1109_v5  ;;  %v372_v18 = vsub.f32 %v1124_v10, %v1138_v14  ;;  %v291_v34 = vsub.f32 %v210_v22, %v1164_v29 }
  0x13   : > { %973 = vmatpush3.msra.mxu0 %v1109_v5  ;;  %v379_v28 = vsub.f32 %v1128_v11, %v1144_v15  ;;  %990 = vmatprep.mubr.f32.mxu1 %v1164_v29  ;;  %v1174_v35 = vand.u32 4294901760, %v219_v32  ;;  %v301_v36 = vsub.f32 %v213_v23, %v1167_v30  ;;  %v311_v37 = vsub.f32 %v216_v24, %v1169_v31 }
  0x14   : > { %v359_v26 = vand.u32 4294901760, %v358_v16  ;;  %v366_v27 = vand.u32 4294901760, %v365_v17  ;;  %974 = vmatprep.subr.mxu0 %v1114_v7  ;;  %v373_v33 = vand.u32 4294901760, %v372_v18  ;;  %v292_v39 = vand.u32 4294901760, %v291_v34 }
  0x15   : > { %975 = vmatpush3.msra.mxu0 %v1114_v7  ;;  %v380_v38 = vand.u32 4294901760, %v379_v28  ;;  %v321_v40 = vsub.f32 %v219_v32, %v1174_v35  ;;  %v302_v41 = vand.u32 4294901760, %v301_v36  ;;  %v312_v42 = vand.u32 4294901760, %v311_v37 }
  0x16   : > { %982 = vmatprep.subr.mxu1 %v359_v26  ;;  %996 = vmatprep.subr.mxu0 %v1118_v8  ;;  %v293_v43 = vsub.f32 %v291_v34, %v292_v39 }
  0x17   : > { %983 = vmatpush3.msra.mxu1 %v359_v26  ;;  %v322_v44 = vand.u32 4294901760, %v321_v40  ;;  %v303_v45 = vsub.f32 %v301_v36, %v302_v41  ;;  %v313_v46 = vsub.f32 %v311_v37, %v312_v42 }
  0x18   : > { %984 = vmatprep.subr.mxu1 %v366_v27  ;;  %v294_v47 = vand.u32 4294901760, %v293_v43 }
  0x19   : > { %985 = vmatpush3.msra.mxu1 %v366_v27  ;;  %v323_v48 = vsub.f32 %v321_v40, %v322_v44  ;;  %v304_v49 = vand.u32 4294901760, %v303_v45  ;;  %v314_v50 = vand.u32 4294901760, %v313_v46 }
  0x1a   : > { %986 = vmatprep.subr.mxu1 %v373_v33  ;;  %976 = vmatprep.mubr.f32.mxu0 %v294_v47 }
  0x1b   : > { %987 = vmatpush3.msra.mxu1 %v373_v33  ;;  %977 = vmatmul.mubr.f32.vlgmr.msra.gmra.mxu0 %v304_v49  ;;  %v324_v51 = vand.u32 4294901760, %v323_v48 }
  0x1c   : > { %988 = vmatprep.subr.mxu1 %v380_v38  ;;  %997 = vmatpush3.msra.mxu0 %v1118_v8 }
  0x1d   : > { %989 = vmatpush3.msra.mxu1 %v380_v38  ;;  %998 = vmatprep.subr.mxu0 %v1121_v9 }
  0x1e   : > { %991 = vmatmul.mubr.f32.vlgmr.msra.gmra.mxu1 %v1167_v30  ;;  %1010 = vmatprep.subr.mxu1 %v1105_v3 }
  0x1f   : > { %1011 = vmatpush3.msra.mxu1 %v1105_v3  ;;  %999 = vmatpush3.msra.mxu0 %v1121_v9 }
  0x20   : > { %1012 = vmatprep.subr.mxu1 %v1107_v4  ;;  %979 = vmatprep.mubr.f32.mxu0 %v314_v50 }
  0x21   : > { %993 = vmatprep.mubr.f32.mxu1 %v1169_v31  ;;  %1000 = vmatprep.subr.mxu0 %v1124_v10 }
  0x22   : > { %1013 = vmatpush3.msra.mxu1 %v1107_v4  ;;  %980 = vmatmul.mubr.f32.gmra.mxu0 %v324_v51 }
  0x23   : > { %994 = vmatmul.mubr.f32.gmra.mxu1 %v1174_v35  ;;  %1001 = vmatpush3.msra.mxu0 %v1124_v10 }
  0x24   : > { %1014 = vmatprep.subr.mxu1 %v1109_v5  ;;  %1002 = vmatprep.subr.mxu0 %v1128_v11 }
  0x25   : > { %1015 = vmatpush3.msra.mxu1 %v1109_v5  ;;  %1003 = vmatpush3.msra.mxu0 %v1128_v11 }
  0x26   : > { %1016 = vmatprep.subr.mxu1 %v1114_v7  ;;  %1004 = vmatprep.mubr.f32.mxu0 %v291_v34 }
  0x27   : > { %1017 = vmatpush3.msra.mxu1 %v1114_v7  ;;  %1018 = vmatprep.mubr.f32.mxu1 %v292_v39 }
  0x28   : > { %1024 = vmatprep.subr.mxu0 %v1131_v12  ;;  %1005 = vmatmul.mubr.f32.vlgmr.msra.gmra.mxu0 %v301_v36 }
  0x29   : > { %1019 = vmatmul.mubr.f32.vlgmr.msra.gmra.mxu1 %v302_v41  ;;  %1025 = vmatpush3.msra.mxu0 %v1131_v12 }
  0x2a   : > { %1038 = vmatprep.subr.mxu1 %v1105_v3  ;;  %1026 = vmatprep.subr.mxu0 %v1135_v13 }
  0x2b   : > { %1039 = vmatpush3.msra.mxu1 %v1105_v3  ;;  %1027 = vmatpush3.msra.mxu0 %v1135_v13  ;;  %v207_v3 = vld [vmem:[%s188_s29 + $0x18] sm:$0xff] }
  0x2c   : > { %1040 = vmatprep.subr.mxu1 %v1107_v4  ;;  %1007 = vmatprep.mubr.f32.mxu0 %v311_v37 }
  0x2d   : > { %1021 = vmatprep.mubr.f32.mxu1 %v312_v42  ;;  %1028 = vmatprep.subr.mxu0 %v1138_v14 }
  0x2e   : > { %1041 = vmatpush3.msra.mxu1 %v1107_v4  ;;  %1008 = vmatmul.mubr.f32.gmra.mxu0 %v321_v40 }
  0x2f   : > { %1022 = vmatmul.mubr.f32.gmra.mxu1 %v322_v44  ;;  %1029 = vmatpush3.msra.mxu0 %v1138_v14 }
  0x30   : > { %1042 = vmatprep.subr.mxu1 %v1109_v5  ;;  %1030 = vmatprep.subr.mxu0 %v1144_v15 }
  0x31   : > { %1043 = vmatpush3.msra.mxu1 %v1109_v5  ;;  %1031 = vmatpush3.msra.mxu0 %v1144_v15  ;;  %v206_v5 = vld [vmem:[%s188_s29 + $0x10] sm:$0xff] }
  0x32   : > { %1044 = vmatprep.subr.mxu1 %v1114_v7  ;;  %1032 = vmatprep.mubr.f32.mxu0 %v1164_v29 }
  0x33   : > { %1045 = vmatpush3.msra.mxu1 %v1114_v7  ;;  %1046 = vmatprep.mubr.f32.mxu1 %v1164_v29 }
  0x34   : > { %1033 = vmatmul.mubr.f32.vlgmr.msra.gmra.mxu0 %v1167_v30  ;;  %1047 = vmatmul.mubr.f32.vlgmr.msra.gmra.mxu1 %v1167_v30 }
  0x35   : > { %1035 = vmatprep.mubr.f32.mxu0 %v1169_v31  ;;  %1049 = vmatprep.mubr.f32.mxu1 %v1169_v31 }
  0x38   : > { %1036 = vmatmul.mubr.f32.gmra.mxu0 %v1174_v35  ;;  %1050 = vmatmul.mubr.f32.gmra.mxu1 %v1174_v35 }
  0xdb   : > { %v978_v53 = vpop.f32.mrf.mxu0 }
  0xdc   : > { %v307_v0 = vadd.f32 %v978_v53, %v205_v60 }
  0xdd   : > { %v296_v54 = vpop.f32.mrf.mxu0 }
  0xde   : > { %v992_v52 = vpop.f32.mrf.mxu1  ;;  %v297_v2 = vadd.f32 %v296_v54, %v204_v61 }
  0xdf   : > { %v424_v6 = vadd.f32 %v992_v52, %v307_v0 }
  0xe0   : > { %v417_v55 = vpop.f32.mrf.mxu1 }
  0xe1   : > { %v418_v9 = vadd.f32 %v417_v55, %v297_v2 }
  0xe2   : > { %v981_v56 = vpop.f32.mrf.mxu0 }
  0xe3   : > { %v995_v57 = vpop.f32.mrf.mxu1  ;;  %v327_v7 = vadd.f32 %v981_v56, %v207_v3 }
  0xe4   : > { %v316_v58 = vpop.f32.mrf.mxu0 }
  0xe5   : > { %v429_v59 = vpop.f32.mrf.mxu1  ;;  %v317_v10 = vadd.f32 %v316_v58, %v206_v5  ;;  %v436_v16 = vadd.f32 %v995_v57, %v327_v7 }
  0xe7   : > { %v430_v17 = vadd.f32 %v429_v59, %v317_v10 }
  0xe8   : > { %v1006_v62 = vpop.f32.mrf.mxu0 }
  0xe9   : > { %v1020_v63 = vpop.f32.mrf.mxu1  ;;  %v523_v12 = vadd.f32 %v1006_v62, %v424_v6 }
  0xea   : > { %v515_v1 = vpop.f32.mrf.mxu0 }
  0xeb   : > { %v613_v4 = vpop.f32.mrf.mxu1  ;;  %v516_v14 = vadd.f32 %v515_v1, %v418_v9  ;;  %v622_v18 = vadd.f32 %v1020_v63, %v523_v12 }
  0xed   : > { %v614_v22 = vadd.f32 %v613_v4, %v516_v14 }
  0xee   : > { %v1009_v8 = vpop.f32.mrf.mxu0 }
  0xef   : > { %v1023_v11 = vpop.f32.mrf.mxu1  ;;  %v537_v19 = vadd.f32 %v1009_v8, %v436_v16 }
  0xf0   : > { %v529_v13 = vpop.f32.mrf.mxu0 }
  0xf1   : > { %v629_v15 = vpop.f32.mrf.mxu1  ;;  %v530_v23 = vadd.f32 %v529_v13, %v430_v17  ;;  %v638_v28 = vadd.f32 %v1023_v11, %v537_v19 }
  0xf3   : > { %v630_v31 = vadd.f32 %v629_v15, %v530_v23 }
  0xf4   : > { %v1034_v20 = vpop.f32.mrf.mxu0  ;;  %v1048_v21 = vpop.f32.mrf.mxu1 }
  0xf5   : > { %v727_v24 = vadd.f32 %v1034_v20, %v622_v18 }
  0xf6   : > { %v720_v25 = vpop.f32.mrf.mxu0  ;;  %v813_v26 = vpop.f32.mrf.mxu1 }
  0xf7   : > { %v721_v27 = vadd.f32 %v720_v25, %v614_v22  ;;  %v820_v33 = vadd.f32 %v1048_v21, %v727_v24 }
  0xf8   : > { %v1037_v29 = vpop.f32.mrf.mxu0  ;;  %v1051_v30 = vpop.f32.mrf.mxu1 }
  0xf9   : > { %v814_v32 = vadd.f32 %v813_v26, %v721_v27  ;;  %v739_v34 = vadd.f32 %v1037_v29, %v638_v28  ;;  %836 = vst.msk [vmem:[%s194_s5 + $0x8] sm:$0xff] %vm208_vm0, %v820_v33 }
  0xfa   : > { %v732_v35 = vpop.f32.mrf.mxu0  ;;  %v825_v37 = vpop.f32.mrf.mxu1 }
  0xfb   : > { %835 = vst.msk [vmem:[%s194_s5] sm:$0xff] %vm208_vm0, %v814_v32  ;;  %v733_v36 = vadd.f32 %v732_v35, %v630_v31  ;;  %v832_v39 = vadd.f32 %v1051_v30, %v739_v34 }
  0xfd   : > { %v826_v38 = vadd.f32 %v825_v37, %v733_v36  ;;  %838 = vst.msk [vmem:[%s194_s5 + $0x18] sm:$0xff] %vm208_vm0, %v832_v39 }
  0xff   : > { %837 = vst.msk [vmem:[%s194_s5 + $0x10] sm:$0xff] %vm208_vm0, %v826_v38 }
 0x100 PF: > { %s13_s12 = sadd.s32 1, %s1066_s12  }
 0x101   : > { %p10_p4 = scmp.ge.s32.totalorder %s13_s12, 4  }
 0x103   :  { %12 = sbr.rel (!%p10_p4) target bundleno = 1 (0x1), region = 65 }

</bundles_post_ra>
